<compile_context>
chip_gen: v5e
topology: v5e:2x2
jax: 0.10.0
libtpu: 0.0.40
codegen_flags: <defaults>
</compile_context>

<pallas_src>
import jax
import jax.numpy as jnp
from jax.experimental import pallas as pl
from jax.experimental.pallas import tpu as pltpu


def _ffn_kernel(x_ref, w12_ref, w3_ref, o_ref, acc_ref):
    # Grid = (M//tm, H//th).
    #   x_ref:   (tm, E)     token tile (block index constant along the h axis)
    #   w12_ref: (E, 2*th)   fused [fc1_tile | fc2_tile] weight slice
    #   w3_ref:  (th, E)     fc3 weight slice
    #   o_ref:   (tm, E)     output tile (written once, at the last h step)
    #   acc_ref: (tm, E) f32 accumulator scratch
    h_idx = pl.program_id(1)

    @pl.when(h_idx == 0)
    def _():
        acc_ref[...] = jnp.zeros_like(acc_ref)

    th = w3_ref.shape[0]
    x = x_ref[...]

    # One fused MXU pass for fc1 and fc2 (single weight DMA stream).
    h12 = jnp.dot(x, w12_ref[...], preferred_element_type=jnp.float32)
    h1 = h12[:, :th]
    h2 = h12[:, th:]

    # SiLU(h1) * h2 -- purely elementwise over the (tm, th) slice, so tiling H
    # is safe (no cross-H dependency before the final contraction).
    # NOTE: padded rows of a partial M block may carry garbage through the
    # sigmoid; they only land in padded accumulator rows which are masked on
    # the final store and never read back.
    gated = (h1 * jax.nn.sigmoid(h1)) * h2

    acc_ref[...] += jnp.dot(gated.astype(w3_ref.dtype), w3_ref[...],
                            preferred_element_type=jnp.float32)

    @pl.when(h_idx == pl.num_programs(1) - 1)
    def _():
        o_ref[...] = acc_ref[...].astype(o_ref.dtype)


def _tpu_generation_and_vmem():
    """Best-effort (chip generation, physical VMEM bytes) with safe fallbacks."""
    vmem = None
    try:
        vmem = getattr(pltpu.get_tpu_info(), "vmem_capacity_bytes", None)
    except Exception:
        vmem = None
    gen = None
    try:
        kind = jax.devices()[0].device_kind.lower()
        for g in (7, 6, 5, 4):
            if str(g) in kind:
                gen = g
                break
    except Exception:
        gen = None
    if vmem is None or vmem <= 0:
        # Unknown hardware: assume the tightest budget (v7x, 64 MiB per TC).
        vmem = (64 << 20) if (gen is None or gen >= 7) else (128 << 20)
    return gen, int(vmem)


def _vmem_footprint(tm, th, E, itemsize):
    """Estimated VMEM bytes for one pipeline configuration, including the f32
    elementwise intermediates the compiler materialises in VMEM."""
    act = 2 * tm * E * itemsize                      # x tile (double buffered)
    out = 2 * tm * E * itemsize                      # out tile (double buffered)
    acc = 4 * tm * E                                 # f32 accumulator scratch
    wgt = (2 * (2 * th) + 2 * th) * E * itemsize     # w12 + w3 tiles, double buffered
    inter = tm * th * (8 + 4 + itemsize)             # h12(f32) + gated(f32) + bf16 cast
    return act + out + acc + wgt + inter


def _pick_tiles(M, E, H, itemsize, gen, budget, tm=None, th=None):
    # Row tile: roofline-aware. Weights are re-streamed from HBM once per
    # i block, so arithmetic intensity ~ tm flops per weight byte (bf16); that
    # must beat the ridge (~240 v5e, ~680 v6e, ~310 v7x flop/byte).
    tm_target = {5: 384, 6: 1024, 7: 512}.get(gen, 512)
    if tm is None:
        tm = tm_target
    tm = min(tm, M)
    if tm < M:
        tm = max(8, (tm // 8) * 8)
    # v7x has 2 TensorCores sharing the "parallel" i axis: guarantee >= 2 blocks.
    if (gen is None or gen >= 7) and pl.cdiv(M, tm) < 2 and M >= 16:
        tm = max(8, ((-(-M // 2)) + 7) // 8 * 8)

    if th is not None:
        assert H % th == 0, "explicit th must divide hidden_dim"
        return tm, th

    # Hidden tile: largest divisor of H (from the per-generation candidate
    # list) whose pipeline fits the VMEM budget. v7x prefers smaller th (spend
    # the reclaimed VMEM on tm); v5e/v6e can afford larger th.
    cands = (512, 256, 128) if (gen is not None and gen >= 7) else (1024, 512, 256, 128)
    divisors = [c for c in cands if H % c == 0] or [H]
    margin = 2 << 20
    while True:
        for c in divisors:
            if _vmem_footprint(tm, c, E, itemsize) + margin <= budget:
                return tm, c
        new_tm = min(M, max(8, ((tm // 2) // 8) * 8))
        if new_tm == tm:
            return tm, divisors[-1]   # last resort: smallest legal tiles
        tm = new_tm


def feed_forward(x, w1, w2, w3, *, tm=None, th=None):
    """x: [batch, seq, emb_dim]; w1, w2: [emb_dim, hidden_dim]; w3: [hidden_dim, emb_dim].

    Weights are stored pre-transposed ([in, out]) so the kernel computes x @ W,
    equivalent to torch's x @ W.T with nn.Linear weights.
    """
    B, S, E = x.shape
    H = w1.shape[1]
    M = B * S
    x2d = x.reshape(M, E)
    itemsize = jnp.dtype(x.dtype).itemsize

    gen, vmem_capacity = _tpu_generation_and_vmem()
    # ~82% of physical VMEM: ~52 MiB on v7x, ~105 MiB on v5e/v6e.
    budget = int(vmem_capacity * 0.82)
    tm, th = _pick_tiles(M, E, H, itemsize, gen, budget, tm, th)

    # Fuse fc1/fc2 into one [E, 2H] weight, interleaved per th-tile so grid
    # block h is [w1_tile_h | w2_tile_h]: one DMA stream + one MXU pass/step.
    # (In a real model this re-layout is a one-time weight preprocess.)
    nH = H // th
    w12 = jnp.concatenate(
        [w1.reshape(E, nH, th), w2.reshape(E, nH, th)], axis=-1
    ).reshape(E, 2 * H)

    grid = (pl.cdiv(M, tm), H // th)

    footprint = _vmem_footprint(tm, th, E, itemsize)
    vmem_limit = int(min(max(budget, footprint + (4 << 20)), vmem_capacity))

    # Real HBM traffic: weights are re-streamed once per i block.
    n_i = pl.cdiv(M, tm)
    cost = pl.CostEstimate(
        flops=2 * M * E * H * 3,
        transcendentals=M * H,
        bytes_accessed=n_i * 3 * E * H * jnp.dtype(w1.dtype).itemsize
        + 2 * M * E * itemsize,
    )

    out2d = pl.pallas_call(
        _ffn_kernel,
        out_shape=jax.ShapeDtypeStruct((M, E), x.dtype),
        grid_spec=pltpu.PrefetchScalarGridSpec(
            num_scalar_prefetch=0,
            grid=grid,
            in_specs=[
                pl.BlockSpec((tm, E), lambda i, h: (i, 0)),        # x rows
                pl.BlockSpec((E, 2 * th), lambda i, h: (0, h)),    # fused w1|w2 slice
                pl.BlockSpec((th, E), lambda i, h: (h, 0)),        # w3 slice
            ],
            out_specs=pl.BlockSpec((tm, E), lambda i, h: (i, 0)),
            scratch_shapes=[pltpu.VMEM((tm, E), jnp.float32)],
        ),
        compiler_params=pltpu.CompilerParams(
            dimension_semantics=("parallel", "arbitrary"),
            vmem_limit_bytes=vmem_limit,
        ),
        cost_estimate=cost,
    )(x2d, w12, w3)

    return out2d.reshape(B, S, E)


def feed_forward_ref(x, w1, w2, w3):
    h1 = x @ w1
    h2 = x @ w2
    return ((h1 * jax.nn.sigmoid(h1)) * h2) @ w3


if __name__ == "__main__":
    # --- Test 1: f32 toy config matching the PyTorch module's small cfg ---
    batch, seq, emb_dim, hidden_dim = 2, 8, 32, 64
    kx, k1, k2, k3 = jax.random.split(jax.random.PRNGKey(0), 4)
    x = jax.random.normal(kx, (batch, seq, emb_dim), dtype=jnp.float32)
    w1 = jax.random.normal(k1, (emb_dim, hidden_dim), dtype=jnp.float32) * 0.05
    w2 = jax.random.normal(k2, (emb_dim, hidden_dim), dtype=jnp.float32) * 0.05
    w3 = jax.random.normal(k3, (hidden_dim, emb_dim), dtype=jnp.float32) * 0.05

    out = jax.block_until_ready(feed_forward(x, w1, w2, w3))
    ref = feed_forward_ref(x, w1, w2, w3)
    assert out.shape == (batch, seq, emb_dim)
    assert jnp.allclose(out, ref, atol=1e-5, rtol=1e-5), "f32 mismatch vs reference"

    # --- Test 2: bf16, multi-block grid on both M and H axes ---
    batch, seq, emb_dim, hidden_dim = 2, 64, 128, 256
    kx, k1, k2, k3 = jax.random.split(jax.random.PRNGKey(1), 4)
    xb = jax.random.normal(kx, (batch, seq, emb_dim)).astype(jnp.bfloat16)
    w1b = (jax.random.normal(k1, (emb_dim, hidden_dim)) * 0.05).astype(jnp.bfloat16)
    w2b = (jax.random.normal(k2, (emb_dim, hidden_dim)) * 0.05).astype(jnp.bfloat16)
    w3b = (jax.random.normal(k3, (hidden_dim, emb_dim)) * 0.05).astype(jnp.bfloat16)

    outb = jax.block_until_ready(feed_forward(xb, w1b, w2b, w3b, tm=64, th=128))
    refb = feed_forward_ref(xb.astype(jnp.float32), w1b.astype(jnp.float32),
                            w2b.astype(jnp.float32), w3b.astype(jnp.float32))
    assert outb.shape == (batch, seq, emb_dim)
    assert jnp.allclose(outb.astype(jnp.float32), refb, atol=2e-2, rtol=5e-2), \
        "bf16 mismatch vs reference"

    # --- Test 3: auto-picked tiles on a non-trivially tiled shape ---
    batch, seq, emb_dim, hidden_dim = 4, 128, 128, 512
    kx, k1, k2, k3 = jax.random.split(jax.random.PRNGKey(2), 4)
    xc = jax.random.normal(kx, (batch, seq, emb_dim), dtype=jnp.float32)
    w1c = jax.random.normal(k1, (emb_dim, hidden_dim), dtype=jnp.float32) * 0.05
    w2c = jax.random.normal(k2, (emb_dim, hidden_dim), dtype=jnp.float32) * 0.05
    w3c = jax.random.normal(k3, (hidden_dim, emb_dim), dtype=jnp.float32) * 0.05

    outc = jax.block_until_ready(feed_forward(xc, w1c, w2c, w3c))
    refc = feed_forward_ref(xc, w1c, w2c, w3c)
    assert jnp.allclose(outc, refc, atol=1e-4, rtol=1e-4), "auto-tile mismatch vs reference"

    print("KERNEL_OK")
</pallas_src>

<mosaic_0001>
module attributes {stable_mosaic.version = 11 : i64} {
  func.func @_ffn_kernel(%arg0: i32, %arg1: i32, %arg2: memref<8x32xf32, #tpu.memory_space<vmem>>, %arg3: memref<32x128xf32, #tpu.memory_space<vmem>>, %arg4: memref<64x32xf32, #tpu.memory_space<vmem>>, %arg5: memref<8x32xf32, #tpu.memory_space<vmem>>, %arg6: memref<8x32xf32, #tpu.memory_space<vmem>>) attributes {dimension_semantics = [#tpu.dimension_semantics<parallel>, #tpu.dimension_semantics<arbitrary>], iteration_bounds = array<i64: 2, 1>, scalar_prefetch = 0 : i64, scratch_operands = 1 : i64, tpu.core_type = #tpu.core_type<tc>, window_params = [{transform_indices = @transform_0, window_bounds = array<i64: 8, 32>}, {transform_indices = @transform_1, window_bounds = array<i64: 32, 128>}, {transform_indices = @transform_2, window_bounds = array<i64: 64, 32>}, {transform_indices = @transform_3, window_bounds = array<i64: 8, 32>}]} {
    %c0_i32 = arith.constant 0 : i32
    %0 = arith.cmpi eq, %arg1, %c0_i32 : i32
    %1 = arith.extui %0 : i1 to i32
    %c0_i32_0 = arith.constant 0 : i32
    %2 = arith.cmpi ne, %1, %c0_i32_0 : i32
    scf.if %2 {
      %cst_14 = arith.constant 0.000000e+00 : f32
      %23 = vector.broadcast %cst_14 : f32 to vector<8x32xf32>
      %c0_15 = arith.constant 0 : index
      %c0_16 = arith.constant 0 : index
      %24 = vector.load %arg6[%c0_15, %c0_16] : memref<8x32xf32, #tpu.memory_space<vmem>>, vector<8x32xf32>
      tpu.vector_store %arg6[%c0_15, %c0_16], %23 {strides = array<i32>} : memref<8x32xf32, #tpu.memory_space<vmem>>, vector<8x32xf32>,
    } else {
    }
    %c0 = arith.constant 0 : index
    %c0_1 = arith.constant 0 : index
    %3 = vector.load %arg2[%c0, %c0_1] : memref<8x32xf32, #tpu.memory_space<vmem>>, vector<8x32xf32>
    %c0_2 = arith.constant 0 : index
    %c0_3 = arith.constant 0 : index
    %4 = vector.load %arg3[%c0_2, %c0_3] : memref<32x128xf32, #tpu.memory_space<vmem>>, vector<32x128xf32>
    %cst = arith.constant dense<0.000000e+00> : vector<8x128xf32>
    %5 = tpu.matmul %3, %4, %cst {dimension_numbers = #tpu.dot_dimension_numbers<[1], [0], [0], [1], [0, 0, 1, 1], [], []>} : vector<8x32xf32>, vector<32x128xf32>, vector<8x128xf32> -> vector<8x128xf32>
    %6 = vector.extract_strided_slice %5 {offsets = [0, 0], sizes = [8, 64], strides = [1, 1]} : vector<8x128xf32> to vector<8x64xf32>
    %7 = vector.extract_strided_slice %5 {offsets = [0, 64], sizes = [8, 64], strides = [1, 1]} : vector<8x128xf32> to vector<8x64xf32>
    %8 = arith.negf %6 : vector<8x64xf32>
    %9 = math.exp %8 : vector<8x64xf32>
    %cst_4 = arith.constant 1.000000e+00 : f32
    %10 = vector.broadcast %cst_4 : f32 to vector<8x64xf32>
    %11 = arith.addf %10, %9 : vector<8x64xf32>
    %12 = arith.divf %10, %11 : vector<8x64xf32>
    %13 = arith.mulf %6, %12 : vector<8x64xf32>
    %14 = arith.mulf %13, %7 : vector<8x64xf32>
    %c0_5 = arith.constant 0 : index
    %c0_6 = arith.constant 0 : index
    %15 = vector.load %arg6[%c0_5, %c0_6] : memref<8x32xf32, #tpu.memory_space<vmem>>, vector<8x32xf32>
    %c0_7 = arith.constant 0 : index
    %c0_8 = arith.constant 0 : index
    %16 = vector.load %arg4[%c0_7, %c0_8] : memref<64x32xf32, #tpu.memory_space<vmem>>, vector<64x32xf32>
    %cst_9 = arith.constant dense<0.000000e+00> : vector<8x32xf32>
    %17 = tpu.matmul %14, %16, %cst_9 {dimension_numbers = #tpu.dot_dimension_numbers<[1], [0], [0], [1], [0, 0, 1, 1], [], []>} : vector<8x64xf32>, vector<64x32xf32>, vector<8x32xf32> -> vector<8x32xf32>
    %18 = arith.addf %15, %17 : vector<8x32xf32>
    %c0_10 = arith.constant 0 : index
    %c0_11 = arith.constant 0 : index
    %19 = vector.load %arg6[%c0_10, %c0_11] : memref<8x32xf32, #tpu.memory_space<vmem>>, vector<8x32xf32>
    tpu.vector_store %arg6[%c0_10, %c0_11], %18 {strides = array<i32>} : memref<8x32xf32, #tpu.memory_space<vmem>>, vector<8x32xf32>,
    %c0_i32_12 = arith.constant 0 : i32
    %20 = arith.cmpi eq, %arg1, %c0_i32_12 : i32
    %21 = arith.extui %20 : i1 to i32
    %c0_i32_13 = arith.constant 0 : i32
    %22 = arith.cmpi ne, %21, %c0_i32_13 : i32
    scf.if %22 {
      %c0_14 = arith.constant 0 : index
      %c0_15 = arith.constant 0 : index
      %23 = vector.load %arg6[%c0_14, %c0_15] : memref<8x32xf32, #tpu.memory_space<vmem>>, vector<8x32xf32>
      %c0_16 = arith.constant 0 : index
      %c0_17 = arith.constant 0 : index
      %24 = vector.load %arg5[%c0_16, %c0_17] : memref<8x32xf32, #tpu.memory_space<vmem>>, vector<8x32xf32>
      tpu.vector_store %arg5[%c0_16, %c0_17], %23 {strides = array<i32>} : memref<8x32xf32, #tpu.memory_space<vmem>>, vector<8x32xf32>,
    } else {
    }
    return
  }
  func.func @transform_0(%arg0: i32, %arg1: i32) -> (i32, i32) {
    %c0_i32 = arith.constant 0 : i32
    %c0_i32_0 = arith.constant 0 : i32
    return %arg0, %c0_i32 : i32, i32
  }
  func.func @transform_1(%arg0: i32, %arg1: i32) -> (i32, i32) {
    %c0_i32 = arith.constant 0 : i32
    %c0_i32_0 = arith.constant 0 : i32
    return %c0_i32, %arg1 : i32, i32
  }
  func.func @transform_2(%arg0: i32, %arg1: i32) -> (i32, i32) {
    %c0_i32 = arith.constant 0 : i32
    %c0_i32_0 = arith.constant 0 : i32
    return %arg1, %c0_i32 : i32, i32
  }
  func.func @transform_3(%arg0: i32, %arg1: i32) -> (i32, i32) {
    %c0_i32 = arith.constant 0 : i32
    %c0_i32_0 = arith.constant 0 : i32
    return %arg0, %c0_i32 : i32, i32
  }
}

</mosaic_0001>

<bundles_post_ra>
// kernel: tpu_custom_call.1
= control target key start
LH: loop header
LB: loop body
LE: loop exit
PB: predicated region body
PF: predicated region fallthrough
CT: control target
= control target key end

     0   :  { %8 = vsyncpa [#allocation4], 0  ;;  %s746_s0 = inlined_call_operand.vmem [shape: f32[16,32], index: 0, kind: input, shape index: {}]   ;;  %s747_s1 = inlined_call_operand.vmem [shape: f32[32,128], index: 1, kind: input, shape index: {}]   ;;  %s748_s2 = inlined_call_operand.vmem [shape: f32[64,32], index: 2, kind: input, shape index: {}]   ;;  %s749_s3 = inlined_call_operand.hbm [shape: f32[16,32], index: 3, kind: output, shape index: {}]  }
   0x1   :  { %10 = vsyncpa [#allocation4 + $0x1], 0  ;;  %s609_s12 = smov 0   ;;  %s611_s13 = smov 0  }
   0x2   :  { %s613_s14 = smov 0   ;;  %s615_s15 = smov 0  }
   0x3   :  { %s617_s16 = smov 0   ;;  %s619_s17 = smov 0  }
   0x4 LB: > { %s430_s18 = sadd.s32 4294967295, %s585_s17   ;;  %s431_s19 = sadd.s32 4294967294, %s585_s17   ;;  %s585_s17 = sphi %s619_s17, %s16_s17   ;;  %s581_s16 = sphi %s617_s16, %s756_s16   ;;  %s577_s15 = sphi %s615_s15, %s755_s15   ;;  %s573_s14 = sphi %s613_s14, %s754_s14   ;;  %s569_s13 = sphi %s611_s13, %s753_s13   ;;  %s565_s12 = sphi %s609_s12, %s752_s12  }
   0x5   : > { %s28_s20 = sadd.s32 1, %s581_s16  ;;  %s113_s21 = sadd.s32 1, %s573_s14 }
   0x6   : > { %p30_p0 = scmp.ge.s32.totalorder %s28_s20, 2  ;;  %p123_p1 = scmp.ne.s32.totalorder %s573_s14, %s569_s13 }
   0x7   : > { %p124_p2 = scmp.eq.s32.totalorder %s430_s18, 1  ;;  %p129_p3 = scmp.ne.s32.totalorder %s569_s13, %s565_s12 }
   0x8   : > { %s758_s20 = smov (%p30_p0, %s28_s20), 0  ;;  %p130_p5 = scmp.eq.s32.totalorder %s431_s19, 1 }
   0x9   : > { %p649_p4 = por %p124_p2, %p123_p1  ;;  %s110_s23 = ssub.s32 %s581_s16, %s758_s20 }
   0xa   : > { %p436_p6 = scmp.ge.s32.totalorder %s585_s17, 1  ;;  %p111_p7 = scmp.eq.s32.totalorder %s110_s23, 0 }
   0xb   : > { %p656_p8 = por %p130_p5, %p129_p3  ;;  %p171_p9 = scmp.lt.s32.totalorder %s585_s17, 3 }
   0xc   : > { %s662_s25 = scalar_select %p111_p7, %s573_s14, %s113_s21  }
   0xd   : > { %p172_p10 = pnand %p436_p6, %p171_p9 }
   0xe   : > { %p203_p11 = scmp.lt.s32.totalorder (!%p172_p10), %s577_s15, 1  ;;  %s588_s28 = smov (!%p172_p10), 64  }
   0xf   : > { %175 = sbr.rel (%p172_p10) target bundleno = 410 (0x19a), region = 32  ;;  %s200_s18 = sand.u32 (!%p172_p10), 1, %s569_s13  }
  0x10   : > { %s437_s19 = sshll.u32 (!%p172_p10), %s200_s18, 3  ;;  %s443_s21 = sshll.u32 (!%p172_p10), %s577_s15, 3 }
  0x11   : > { %s328_s27 = scalar_lea.hbm (!%p172_p10), %s749_s3, %s443_s21  ;;  %s318_s4 = scalar_lea.sflag (!%p172_p10), [#allocation4], %s200_s18 }
  0x12   : > { %s332_s30 = sshll.u32 (!%p172_p10), %s328_s27, 4  ;;  %s333_s30 = int_to_ptr.hbm [resolvable:$true] %s332_s30 }
  0x14   : > { %v227_v0 = vld [vmem:[%s747_s1 + $0x18] sm:$0xff]  ;;  %v226_v1 = vld [vmem:[%s747_s1 + $0x10] sm:$0xff]  ;;  %vm221_vm0 = vcmask 261120   ;;  %v587_v2 = vmov 0.0   ;;  %v225_v3 = vld [vmem:[%s747_s1 + $0x8] sm:$0xff]  ;;  %s204_s5 = scalar_select %p203_p11, %s577_s15, 1 }
  0x15   : > { %244 = vmatpush.msra.mxu0 %v227_v0  ;;  %222 = vst.msk [vmem:[#allocation2] sm:$0xff] %vm221_vm0, %v587_v2  ;;  %v224_v4 = vld [vmem:[%s747_s1] sm:$0xff]  ;;  %v285_v6 = vld [vmem:[%s748_s2 + $0x38] sm:$0xff]  ;;  %v284_v7 = vld [vmem:[%s748_s2 + $0x30] sm:$0xff]  ;;  %vm286_vm5 = vcmask 523264  }
  0x16   : > { %s438_s8 = sshll.u32 %s204_s5, 3  ;;  %298 = vmatpush.msra.mxu1 %v285_v6  ;;  %v283_v8 = vld [vmem:[%s748_s2 + $0x28] sm:$0xff]  ;;  %v282_v10 = vld [vmem:[%s748_s2 + $0x20] sm:$0xff]  ;;  %v281_v11 = vld [vmem:[%s748_s2 + $0x18] sm:$0xff]  ;;  %s521_s5 = sshra.s32 %s333_s30, 4  ;;  %s522_s5 = int_to_ptr.hbm [resolvable:$true] %s521_s5 }
  0x17   : > { %245 = vmatpush.msra.mxu0 %v226_v1  ;;  %s206_s11 = scalar_lea.vmem %s746_s0, %s438_s8  ;;  %v280_v12 = vld [vmem:[%s748_s2 + $0x10] sm:$0xff]  ;;  %v279_v16 = vld [vmem:[%s748_s2 + $0x8] sm:$0xff]  ;;  %v278_v17 = vld [vmem:[%s748_s2] sm:$0xff]  ;;  %s523_s15 = scalar_lea.hbm %s522_s5, 8 }
  0x18   : > { %v223_v5 = vld [vmem:[%s206_s11] sm:$0xff]  ;;  %299 = vmatpush.msra.mxu1 %v284_v7  ;;  %p524_p12 = scmp.ne.s32.totalorder %s522_s5, %s523_s15  ;;  %s527_s8 = scalar_lea.hbm %s749_s3, 16 }
  0x19   : > { %246 = vmatpush.msra.mxu0 %v225_v3  ;;  %p528_p1 = scmp.lt.s32.totalorder %s522_s5, %s749_s3  ;;  %p529_p2 = scmp.lt.s32.totalorder %s527_s8, %s523_s15 }
  0x1a   : > { %300 = vmatpush.msra.mxu1 %v283_v8  ;;  %p525_p13 = pnand %p524_p12, %p649_p4 }
  0x1b   : > { %247 = vmatpush.msra.mxu0 %v224_v4  ;;  %p530_p3 = por %p529_p2, %p528_p1 }
  0x1c   : > { %439 = vmatmul.msk.f32.vlgmr.msra.gmra.mxu0 %vm221_vm0, %v223_v5  ;;  %301 = vmatpush.msra.mxu1 %v282_v10  ;;  %v277_v31 = vld [vmem:[#allocation2] sm:$0xff]  ;;  %p526_p0 = pneg %p525_p13 }
  0x1e   : > { %302 = vmatpush.msra.mxu1 %v281_v11  ;;  %p531_p5 = pnand %p530_p3, %p526_p0 }
  0x20   : > { %303 = vmatpush.msra.mxu1 %v280_v12 }
  0x22   : > { %304 = vmatpush.msra.mxu1 %v279_v16 }
  0x24   : > { %305 = vmatpush.msra.mxu1 %v278_v17 }
  0x99   : > { %v249_v9 = vpop.f32.mrf.mxu0 }
  0x9a   : > { %273 = vrot.lane.b32.xlu0 %v249_v9, %s588_s28  ;;  %v440_v13 = vmul.f32 -1.442695, %v249_v9  ;;  %s202_s28 = scalar_lea.vmem [#allocation3], %s437_s19 }
  0x9b   : > { %s330_s29 = sshll.u32 %s202_s28, 4  ;;  %s331_s29 = int_to_ptr.vmem [resolvable:$true] %s330_s29 }
  0x9c   : > { %503 = vpow2.f32 %v440_v13 }
  0xa2   : > { %v504_v14 = vpop.eup %503 }
  0xa3   : > { %v255_v15 = vadd.f32 1.0, %v504_v14 }
  0xa5   : > { %505 = vrcp.f32 %v255_v15  ;;  %v267_v23 = vand.u32 2147483648, %v255_v15  ;;  %vm261_vm2 = vweird.f32 %v255_v15  ;;  %v265_v24 = vand.u32 2147483647, %v255_v15 }
  0xa7   : > { %v268_v26 = vor.u32 1.1754944e-38, %v267_v23  ;;  %vm266_vm4 = vcmp.eq.f32.partialorder %v265_v24, 8.507059e+37 }
  0xab   : > { %v506_v18 = vpop.eup %505 }
  0xac   : > { %v257_v19 = vmul.f32 %v506_v18, %v255_v15  ;;  %vm262_vm1 = vweird.f32 %v506_v18 }
  0xad   : > { %vm263_vm3 = vmor %vm261_vm2, %vm262_vm1 }
  0xae   : > { %v258_v20 = vsub.f32 1.0, %v257_v19 }
  0xb0   : > { %v259_v21 = vmul.f32 %v506_v18, %v258_v20 }
  0xb2   : > { %v260_v22 = vadd.f32 %v506_v18, %v259_v21 }
  0xb4   : > { %v264_v25 = vsel %vm263_vm3, %v506_v18, %v260_v22 }
  0xb5   : > { %v269_v27 = vsel %vm266_vm4, %v268_v26, %v264_v25 }
  0xb6   : > { %v271_v28 = vmul.f32 %v269_v27, %v249_v9 }
 0x10c   : > { %v274_v29 = vpop.permute.xlu0 %273 }
 0x10d   : > { %v276_v30 = vmul.f32 %v274_v29, %v271_v28 }
 0x10f   : > { %441 = vmatmul.msk.f32.vlgmr.msra.gmra.mxu1 %vm286_vm5, %v276_v30 }
 0x18c   : > { %v307_v32 = vpop.f32.mrf.mxu1 }
 0x18d   : > { %v310_v33 = vadd.f32 %v307_v32, %v277_v31 }
 0x18f   : > { %311 = vst.msk [vmem:[#allocation2] sm:$0xff] %vm221_vm0, %v310_v33 }
 0x196   : > { %v315_v34 = vld [vmem:[#allocation2] sm:$0xff] }
 0x197   : > { %316 = vst.msk [vmem:[%s202_s28] sm:$0xff] %vm221_vm0, %v315_v34 }
 0x198   : > { %534 = shalt.err (!%p531_p5)
}
 0x199   : > { %446 = dma.vmem_to_hbm [thread:$0]  (%p649_p4), %s331_s29, 128, %s333_s30, %s318_s4  }
 0x19a PF: > { %p452_p6 = scmp.ge.s32.totalorder %s585_s17, 2  ;;  %s344_s11 = sand.u32 1, %s565_s12  }
 0x19b   : > { %s345_s18 = scalar_lea.sflag [#allocation4], %s344_s11 }
 0x19c   : > { %p449_p7 = pnand %p452_p6, %p656_p8 }
 0x19e   : > { %p450_p9 = pneg %p449_p7 }
 0x1a0   : > { %560 = dma.done.wait (%p450_p9), %s345_s18, 128  }
 0x1a1   : > { %562 = vsyncadd (%p450_p9), %s345_s18, 4294967168  ;;  %s16_s17 = sadd.s32 1, %s585_s17   ;;  %s752_s12 = smov %s569_s13 }
 0x1a2   : > { %p13_p10 = scmp.ge.s32.totalorder %s16_s17, 4   ;;  %s753_s13 = smov %s573_s14 }
 0x1a3   : > { %s754_s14 = smov %s662_s25  ;;  %s755_s15 = smov %s581_s16 }
 0x1a4   : > { %s756_s16 = smov %s758_s20  ;;  %15 = sbr.rel (!%p13_p10) target bundleno = 4 (0x4), region = 81 }
 0x1a9   :  { %351 = vsyncpa [#allocation4], 1 }
 0x1aa   :  { %353 = vsyncpa [#allocation4 + $0x1], 1 }

</bundles_post_ra>
